<compile_context>
chip_gen: v6e
topology: v6e:2x2x1
jax: 0.10.0
libtpu: 0.0.40
codegen_flags: <defaults>
</compile_context>

<pallas_src>
import functools

import jax
import jax.numpy as jnp
from jax import lax
from jax.experimental import pallas as pl
from jax.experimental.pallas import tpu as pltpu


_LANES = 512         # lane-dense last dim (multiple of 128)
_MAX_TILE_M = 1024   # rows per grid step -> 2 MiB per input per step
_ROW_GROUP = 8       # sublane rows processed per inner-loop iteration


def _round_up(x, m):
    return ((x + m - 1) // m) * m


def _train_loss_kernel(o1_ref, o2_ref, o3_ref, lab_ref, out_ref,
                       acc1_ref, acc2_ref, acc3_ref, *,
                       tile_m, valid_rows, inner_tiles, unroll):
    p = pl.program_id(0)   # TensorCore split ("parallel")
    i = pl.program_id(1)   # row-tile reduction axis ("arbitrary")

    @pl.when(i == 0)
    def _init():
        acc1_ref[...] = jnp.zeros_like(acc1_ref)
        acc2_ref[...] = jnp.zeros_like(acc2_ref)
        acc3_ref[...] = jnp.zeros_like(acc3_ref)

    # Global row offset of this tile (UNclamped; only the DMA's block index is
    # clamped in the index_map).  Rows >= valid_rows are garbage coming from a
    # clamped partial-block DMA and must be masked out.
    row_base = (p * inner_tiles + i) * tile_m
    sub_iota = lax.broadcasted_iota(jnp.int32, (_ROW_GROUP, 1), 0)

    n_groups = tile_m // _ROW_GROUP

    def body(g, carry):
        r = pl.multiple_of(g * _ROW_GROUP, _ROW_GROUP)
        sl = pl.ds(r, _ROW_GROUP)
        valid = (row_base + r + sub_iota) < valid_rows          # (8, 1) mask
        lab = lab_ref[sl, :].astype(jnp.float32)
        acc1_ref[...] += jnp.where(
            valid, jnp.abs(lab - o1_ref[sl, :].astype(jnp.float32)), 0.0)
        acc2_ref[...] += jnp.where(
            valid, jnp.abs(lab - o2_ref[sl, :].astype(jnp.float32)), 0.0)
        acc3_ref[...] += jnp.where(
            valid, jnp.abs(lab - o3_ref[sl, :].astype(jnp.float32)), 0.0)
        return carry

    lax.fori_loop(0, n_groups, body, 0, unroll=unroll)

    # Cross-lane / cross-sublane reduction happens exactly once per core.
    @pl.when(i == pl.num_programs(1) - 1)
    def _finalize():
        s1 = jnp.sum(acc1_ref[...])
        s2 = jnp.sum(acc2_ref[...])
        s3 = jnp.sum(acc3_ref[...])
        lane = lax.broadcasted_iota(jnp.int32, out_ref.shape, 1)
        out_ref[...] = (jnp.where(lane == 0, s1, 0.0)
                        + jnp.where(lane == 1, s2, 0.0)
                        + jnp.where(lane == 2, s3, 0.0))


@jax.jit
def train_loss(outd1, outd2, outd3, label):
    """Pallas implementation of Train_loss.forward.

    Returns (d1loss, d2loss, d3loss, loss) as float32 scalars.
    """
    lanes = _LANES
    label2 = jnp.reshape(label, (-1, 11))
    n_rows, n_feat = label2.shape
    assert outd1.shape == (n_rows, n_feat)
    assert outd2.shape == (n_rows, n_feat)
    assert outd3.shape == (n_rows, n_feat)

    total = n_rows * n_feat
    inv_n = 1.0 / float(total)

    # Lane-dense view: flatten (free) + pad by < lanes*8 zeros so the flat
    # length is a multiple of lanes*8 (rows is then a multiple of 8 and >= 8).
    pad_mult = lanes * 8
    padded = _round_up(total, pad_mult)
    rows = padded // lanes

    def lane_dense(x):
        flat = jnp.reshape(x, (-1,))
        if padded != total:
            flat = jnp.pad(flat, (0, padded - total))  # zeros: |0-0| == 0
        return jnp.reshape(flat, (rows, lanes))

    a1 = lane_dense(outd1)
    a2 = lane_dense(outd2)
    a3 = lane_dense(outd3)
    lab = lane_dense(label2)

    tile_m = min(_MAX_TILE_M, rows)                 # multiple of 8
    num_row_tiles = pl.cdiv(rows, tile_m)
    # Leading "parallel" axis: one half of the row tiles per TensorCore on
    # v7x; on single-core chips it is just a (cheap) serial outer loop.
    num_splits = 2 if num_row_tiles >= 2 else 1
    inner_tiles = pl.cdiv(num_row_tiles, num_splits)

    def in_index(p, i):
        t = p * inner_tiles + i
        return (jnp.minimum(t, num_row_tiles - 1), 0)   # clamp OOB tiles

    in_spec = pl.BlockSpec((tile_m, lanes), in_index)
    out_spec = pl.BlockSpec((8, 128), lambda p, i: (p, 0))

    n_groups = tile_m // _ROW_GROUP
    unroll = min(8, n_groups)

    kernel = functools.partial(
        _train_loss_kernel,
        tile_m=tile_m, valid_rows=rows, inner_tiles=inner_tiles, unroll=unroll)

    partials = pl.pallas_call(
        kernel,
        out_shape=jax.ShapeDtypeStruct((num_splits * 8, 128), jnp.float32),
        grid=(num_splits, inner_tiles),
        in_specs=[in_spec, in_spec, in_spec, in_spec],
        out_specs=out_spec,
        scratch_shapes=[pltpu.VMEM((8, lanes), jnp.float32)] * 3,
        compiler_params=pltpu.CompilerParams(
            dimension_semantics=("parallel", "arbitrary"),
            vmem_limit_bytes=40 * 1024 * 1024,
            allow_input_fusion=[True, True, True, True],
        ),
    )(a1, a2, a3, lab)

    # Add the per-core partial sums (all 8 sublanes of each partial row hold
    # the same values; take sublane 0), then normalize by the true N*11.
    sums = jnp.sum(partials.reshape(num_splits, 8, 128)[:, 0, :], axis=0)
    d1 = sums[0] * inv_n
    d2 = sums[1] * inv_n
    d3 = sums[2] * inv_n
    loss = d1 + d2 + d3
    return d1, d2, d3, loss


if __name__ == "__main__":
    key = jax.random.PRNGKey(0)
    k1, k2, k3, k4 = jax.random.split(key, 4)

    # Small shapes consistent with the forward: label (2, 4, 11) -> (8, 11),
    # predictions already (8, 11).
    B, G, C = 2, 4, 11
    N = B * G
    label = jax.random.uniform(k1, (B, G, C), dtype=jnp.float32)
    outd1 = jax.random.uniform(k2, (N, C), dtype=jnp.float32)
    outd2 = jax.random.uniform(k3, (N, C), dtype=jnp.float32)
    outd3 = jax.random.uniform(k4, (N, C), dtype=jnp.float32)

    d1, d2, d3, loss = jax.block_until_ready(
        train_loss(outd1, outd2, outd3, label))

    # Reference check in plain JAX.
    lbl = label.reshape(-1, 11)
    r1 = jnp.mean(jnp.abs(lbl - outd1))
    r2 = jnp.mean(jnp.abs(lbl - outd2))
    r3 = jnp.mean(jnp.abs(lbl - outd3))
    rl = r1 + r2 + r3
    assert jnp.allclose(d1, r1, atol=1e-5), (d1, r1)
    assert jnp.allclose(d2, r2, atol=1e-5), (d2, r2)
    assert jnp.allclose(d3, r3, atol=1e-5), (d3, r3)
    assert jnp.allclose(loss, rl, atol=1e-5), (loss, rl)

    print("KERNEL_OK")
</pallas_src>

<mosaic_0001>
module attributes {stable_mosaic.version = 11 : i64} {
  func.func @_train_loss_kernel(%arg0: i32, %arg1: i32, %arg2: memref<8x512xf32, #tpu.memory_space<vmem>>, %arg3: memref<8x512xf32, #tpu.memory_space<vmem>>, %arg4: memref<8x512xf32, #tpu.memory_space<vmem>>, %arg5: memref<8x512xf32, #tpu.memory_space<vmem>>, %arg6: memref<8x128xf32, #tpu.memory_space<vmem>>, %arg7: memref<8x512xf32, #tpu.memory_space<vmem>>, %arg8: memref<8x512xf32, #tpu.memory_space<vmem>>, %arg9: memref<8x512xf32, #tpu.memory_space<vmem>>) attributes {dimension_semantics = [#tpu.dimension_semantics<parallel>, #tpu.dimension_semantics<arbitrary>], iteration_bounds = array<i64: 1, 1>, scalar_prefetch = 0 : i64, scratch_operands = 3 : i64, tpu.core_type = #tpu.core_type<tc>, window_params = [{transform_indices = @transform_0, window_bounds = array<i64: 8, 512>}, {transform_indices = @transform_1, window_bounds = array<i64: 8, 512>}, {transform_indices = @transform_2, window_bounds = array<i64: 8, 512>}, {transform_indices = @transform_3, window_bounds = array<i64: 8, 512>}, {transform_indices = @transform_4, window_bounds = array<i64: 8, 128>}]} {
    %c0_i32 = arith.constant 0 : i32
    %0 = arith.cmpi eq, %arg1, %c0_i32 : i32
    %1 = arith.extui %0 : i1 to i32
    %c0_i32_0 = arith.constant 0 : i32
    %2 = arith.cmpi ne, %1, %c0_i32_0 : i32
    scf.if %2 {
      %cst_24 = arith.constant 0.000000e+00 : f32
      %52 = vector.broadcast %cst_24 : f32 to vector<8x512xf32>
      %c0_25 = arith.constant 0 : index
      %c0_26 = arith.constant 0 : index
      %53 = vector.load %arg7[%c0_25, %c0_26] : memref<8x512xf32, #tpu.memory_space<vmem>>, vector<8x512xf32>
      tpu.vector_store %arg7[%c0_25, %c0_26], %52 {strides = array<i32>} : memref<8x512xf32, #tpu.memory_space<vmem>>, vector<8x512xf32>,
      %cst_27 = arith.constant 0.000000e+00 : f32
      %54 = vector.broadcast %cst_27 : f32 to vector<8x512xf32>
      %c0_28 = arith.constant 0 : index
      %c0_29 = arith.constant 0 : index
      %55 = vector.load %arg8[%c0_28, %c0_29] : memref<8x512xf32, #tpu.memory_space<vmem>>, vector<8x512xf32>
      tpu.vector_store %arg8[%c0_28, %c0_29], %54 {strides = array<i32>} : memref<8x512xf32, #tpu.memory_space<vmem>>, vector<8x512xf32>,
      %cst_30 = arith.constant 0.000000e+00 : f32
      %56 = vector.broadcast %cst_30 : f32 to vector<8x512xf32>
      %c0_31 = arith.constant 0 : index
      %c0_32 = arith.constant 0 : index
      %57 = vector.load %arg9[%c0_31, %c0_32] : memref<8x512xf32, #tpu.memory_space<vmem>>, vector<8x512xf32>
      tpu.vector_store %arg9[%c0_31, %c0_32], %56 {strides = array<i32>} : memref<8x512xf32, #tpu.memory_space<vmem>>, vector<8x512xf32>,
    } else {
    }
    %c1_i32 = arith.constant 1 : i32
    %3 = arith.muli %arg0, %c1_i32 : i32
    %4 = arith.addi %3, %arg1 : i32
    %c8_i32 = arith.constant 8 : i32
    %5 = arith.muli %4, %c8_i32 : i32
    %6 = tpu.iota {dimensions = array<i32: 0>} : vector<8x1xi32>
    %c0_i32_1 = arith.constant 0 : i32
    %c8_i32_2 = arith.constant 8 : i32
    %7 = arith.muli %c0_i32_1, %c8_i32_2 : i32
    %8 = tpu.assume_multiple %7, 8 : i32
    %9 = arith.addi %5, %8 : i32
    %10 = vector.broadcast %9 : i32 to vector<8x1xi32>
    %11 = arith.addi %10, %6 : vector<8x1xi32>
    %c8_i32_3 = arith.constant 8 : i32
    %12 = vector.broadcast %c8_i32_3 : i32 to vector<8x1xi32>
    %13 = arith.cmpi slt, %11, %12 : vector<8x1xi32>
    %14 = arith.index_cast %8 : i32 to index
    %c0 = arith.constant 0 : index
    %15 = vector.load %arg5[%14, %c0] : memref<8x512xf32, #tpu.memory_space<vmem>>, vector<8x512xf32>
    %c0_4 = arith.constant 0 : index
    %c0_5 = arith.constant 0 : index
    %16 = vector.load %arg7[%c0_4, %c0_5] : memref<8x512xf32, #tpu.memory_space<vmem>>, vector<8x512xf32>
    %17 = arith.index_cast %8 : i32 to index
    %c0_6 = arith.constant 0 : index
    %18 = vector.load %arg2[%17, %c0_6] : memref<8x512xf32, #tpu.memory_space<vmem>>, vector<8x512xf32>
    %19 = arith.subf %15, %18 : vector<8x512xf32>
    %20 = math.absf %19 : vector<8x512xf32>
    %cst = arith.constant 0.000000e+00 : f32
    %21 = vector.shape_cast %13 : vector<8x1xi1> to vector<8x1xi1>
    %22 = vector.broadcast %21 : vector<8x1xi1> to vector<8x512xi1>
    %23 = vector.broadcast %cst : f32 to vector<8x512xf32>
    %24 = arith.select %22, %20, %23 : vector<8x512xi1>, vector<8x512xf32>
    %25 = arith.addf %16, %24 : vector<8x512xf32>
    %c0_7 = arith.constant 0 : index
    %c0_8 = arith.constant 0 : index
    %26 = vector.load %arg7[%c0_7, %c0_8] : memref<8x512xf32, #tpu.memory_space<vmem>>, vector<8x512xf32>
    tpu.vector_store %arg7[%c0_7, %c0_8], %25 {strides = array<i32>} : memref<8x512xf32, #tpu.memory_space<vmem>>, vector<8x512xf32>,
    %c0_9 = arith.constant 0 : index
    %c0_10 = arith.constant 0 : index
    %27 = vector.load %arg8[%c0_9, %c0_10] : memref<8x512xf32, #tpu.memory_space<vmem>>, vector<8x512xf32>
    %28 = arith.index_cast %8 : i32 to index
    %c0_11 = arith.constant 0 : index
    %29 = vector.load %arg3[%28, %c0_11] : memref<8x512xf32, #tpu.memory_space<vmem>>, vector<8x512xf32>
    %30 = arith.subf %15, %29 : vector<8x512xf32>
    %31 = math.absf %30 : vector<8x512xf32>
    %cst_12 = arith.constant 0.000000e+00 : f32
    %32 = vector.shape_cast %13 : vector<8x1xi1> to vector<8x1xi1>
    %33 = vector.broadcast %32 : vector<8x1xi1> to vector<8x512xi1>
    %34 = vector.broadcast %cst_12 : f32 to vector<8x512xf32>
    %35 = arith.select %33, %31, %34 : vector<8x512xi1>, vector<8x512xf32>
    %36 = arith.addf %27, %35 : vector<8x512xf32>
    %c0_13 = arith.constant 0 : index
    %c0_14 = arith.constant 0 : index
    %37 = vector.load %arg8[%c0_13, %c0_14] : memref<8x512xf32, #tpu.memory_space<vmem>>, vector<8x512xf32>
    tpu.vector_store %arg8[%c0_13, %c0_14], %36 {strides = array<i32>} : memref<8x512xf32, #tpu.memory_space<vmem>>, vector<8x512xf32>,
    %c0_15 = arith.constant 0 : index
    %c0_16 = arith.constant 0 : index
    %38 = vector.load %arg9[%c0_15, %c0_16] : memref<8x512xf32, #tpu.memory_space<vmem>>, vector<8x512xf32>
    %39 = arith.index_cast %8 : i32 to index
    %c0_17 = arith.constant 0 : index
    %40 = vector.load %arg4[%39, %c0_17] : memref<8x512xf32, #tpu.memory_space<vmem>>, vector<8x512xf32>
    %41 = arith.subf %15, %40 : vector<8x512xf32>
    %42 = math.absf %41 : vector<8x512xf32>
    %cst_18 = arith.constant 0.000000e+00 : f32
    %43 = vector.shape_cast %13 : vector<8x1xi1> to vector<8x1xi1>
    %44 = vector.broadcast %43 : vector<8x1xi1> to vector<8x512xi1>
    %45 = vector.broadcast %cst_18 : f32 to vector<8x512xf32>
    %46 = arith.select %44, %42, %45 : vector<8x512xi1>, vector<8x512xf32>
    %47 = arith.addf %38, %46 : vector<8x512xf32>
    %c0_19 = arith.constant 0 : index
    %c0_20 = arith.constant 0 : index
    %48 = vector.load %arg9[%c0_19, %c0_20] : memref<8x512xf32, #tpu.memory_space<vmem>>, vector<8x512xf32>
    tpu.vector_store %arg9[%c0_19, %c0_20], %47 {strides = array<i32>} : memref<8x512xf32, #tpu.memory_space<vmem>>, vector<8x512xf32>,
    %c1_i32_21 = arith.constant 1 : i32
    %c0_i32_22 = arith.constant 0 : i32
    %49 = arith.cmpi eq, %arg1, %c0_i32_22 : i32
    %50 = arith.extui %49 : i1 to i32
    %c0_i32_23 = arith.constant 0 : i32
    %51 = arith.cmpi ne, %50, %c0_i32_23 : i32
    scf.if %51 {
      %c0_24 = arith.constant 0 : index
      %c0_25 = arith.constant 0 : index
      %52 = vector.load %arg7[%c0_24, %c0_25] : memref<8x512xf32, #tpu.memory_space<vmem>>, vector<8x512xf32>
      %53 = vector.shape_cast %52 : vector<8x512xf32> to vector<1x8x512xf32>
      %cst_26 = arith.constant dense<0.000000e+00> : vector<1xf32>
      %54 = vector.multi_reduction <add>, %53, %cst_26 [1, 2] : vector<1x8x512xf32> to vector<1xf32>
      %55 = vector.shape_cast %54 : vector<1xf32> to vector<1x1x1xf32>
      %56 = vector.extract %55[0, 0, 0] : f32 from vector<1x1x1xf32>
      %c0_27 = arith.constant 0 : index
      %c0_28 = arith.constant 0 : index
      %57 = vector.load %arg8[%c0_27, %c0_28] : memref<8x512xf32, #tpu.memory_space<vmem>>, vector<8x512xf32>
      %58 = vector.shape_cast %57 : vector<8x512xf32> to vector<1x8x512xf32>
      %cst_29 = arith.constant dense<0.000000e+00> : vector<1xf32>
      %59 = vector.multi_reduction <add>, %58, %cst_29 [1, 2] : vector<1x8x512xf32> to vector<1xf32>
      %60 = vector.shape_cast %59 : vector<1xf32> to vector<1x1x1xf32>
      %61 = vector.extract %60[0, 0, 0] : f32 from vector<1x1x1xf32>
      %c0_30 = arith.constant 0 : index
      %c0_31 = arith.constant 0 : index
      %62 = vector.load %arg9[%c0_30, %c0_31] : memref<8x512xf32, #tpu.memory_space<vmem>>, vector<8x512xf32>
      %63 = vector.shape_cast %62 : vector<8x512xf32> to vector<1x8x512xf32>
      %cst_32 = arith.constant dense<0.000000e+00> : vector<1xf32>
      %64 = vector.multi_reduction <add>, %63, %cst_32 [1, 2] : vector<1x8x512xf32> to vector<1xf32>
      %65 = vector.shape_cast %64 : vector<1xf32> to vector<1x1x1xf32>
      %66 = vector.extract %65[0, 0, 0] : f32 from vector<1x1x1xf32>
      %67 = tpu.iota {dimensions = array<i32: 1>} : vector<8x128xi32>
      %c0_i32_33 = arith.constant 0 : i32
      %68 = vector.broadcast %c0_i32_33 : i32 to vector<8x128xi32>
      %69 = arith.cmpi eq, %67, %68 : vector<8x128xi32>
      %cst_34 = arith.constant 0.000000e+00 : f32
      %70 = vector.broadcast %56 : f32 to vector<8x128xf32>
      %71 = vector.broadcast %cst_34 : f32 to vector<8x128xf32>
      %72 = arith.select %69, %70, %71 : vector<8x128xi1>, vector<8x128xf32>
      %c1_i32_35 = arith.constant 1 : i32
      %73 = vector.broadcast %c1_i32_35 : i32 to vector<8x128xi32>
      %74 = arith.cmpi eq, %67, %73 : vector<8x128xi32>
      %cst_36 = arith.constant 0.000000e+00 : f32
      %75 = vector.broadcast %61 : f32 to vector<8x128xf32>
      %76 = vector.broadcast %cst_36 : f32 to vector<8x128xf32>
      %77 = arith.select %74, %75, %76 : vector<8x128xi1>, vector<8x128xf32>
      %78 = arith.addf %72, %77 : vector<8x128xf32>
      %c2_i32 = arith.constant 2 : i32
      %79 = vector.broadcast %c2_i32 : i32 to vector<8x128xi32>
      %80 = arith.cmpi eq, %67, %79 : vector<8x128xi32>
      %cst_37 = arith.constant 0.000000e+00 : f32
      %81 = vector.broadcast %66 : f32 to vector<8x128xf32>
      %82 = vector.broadcast %cst_37 : f32 to vector<8x128xf32>
      %83 = arith.select %80, %81, %82 : vector<8x128xi1>, vector<8x128xf32>
      %84 = arith.addf %78, %83 : vector<8x128xf32>
      %c0_38 = arith.constant 0 : index
      %c0_39 = arith.constant 0 : index
      %85 = vector.load %arg6[%c0_38, %c0_39] : memref<8x128xf32, #tpu.memory_space<vmem>>, vector<8x128xf32>
      tpu.vector_store %arg6[%c0_38, %c0_39], %84 {strides = array<i32>} : memref<8x128xf32, #tpu.memory_space<vmem>>, vector<8x128xf32>,
    } else {
    }
    return
  }
  func.func @transform_0(%arg0: i32, %arg1: i32) -> (i32, i32) {
    %c1_i32 = arith.constant 1 : i32
    %0 = arith.muli %arg0, %c1_i32 : i32
    %1 = arith.addi %0, %arg1 : i32
    %c0_i32 = arith.constant 0 : i32
    %2 = arith.minsi %1, %c0_i32 : i32
    %c0_i32_0 = arith.constant 0 : i32
    %c0_i32_1 = arith.constant 0 : i32
    return %2, %c0_i32_0 : i32, i32
  }
  func.func @transform_1(%arg0: i32, %arg1: i32) -> (i32, i32) {
    %c1_i32 = arith.constant 1 : i32
    %0 = arith.muli %arg0, %c1_i32 : i32
    %1 = arith.addi %0, %arg1 : i32
    %c0_i32 = arith.constant 0 : i32
    %2 = arith.minsi %1, %c0_i32 : i32
    %c0_i32_0 = arith.constant 0 : i32
    %c0_i32_1 = arith.constant 0 : i32
    return %2, %c0_i32_0 : i32, i32
  }
  func.func @transform_2(%arg0: i32, %arg1: i32) -> (i32, i32) {
    %c1_i32 = arith.constant 1 : i32
    %0 = arith.muli %arg0, %c1_i32 : i32
    %1 = arith.addi %0, %arg1 : i32
    %c0_i32 = arith.constant 0 : i32
    %2 = arith.minsi %1, %c0_i32 : i32
    %c0_i32_0 = arith.constant 0 : i32
    %c0_i32_1 = arith.constant 0 : i32
    return %2, %c0_i32_0 : i32, i32
  }
  func.func @transform_3(%arg0: i32, %arg1: i32) -> (i32, i32) {
    %c1_i32 = arith.constant 1 : i32
    %0 = arith.muli %arg0, %c1_i32 : i32
    %1 = arith.addi %0, %arg1 : i32
    %c0_i32 = arith.constant 0 : i32
    %2 = arith.minsi %1, %c0_i32 : i32
    %c0_i32_0 = arith.constant 0 : i32
    %c0_i32_1 = arith.constant 0 : i32
    return %2, %c0_i32_0 : i32, i32
  }
  func.func @transform_4(%arg0: i32, %arg1: i32) -> (i32, i32) {
    %c0_i32 = arith.constant 0 : i32
    %c0_i32_0 = arith.constant 0 : i32
    return %arg0, %c0_i32 : i32, i32
  }
}

</mosaic_0001>

<bundles_post_ra>
// kernel: train_loss.1
= control target key start
LH: loop header
LB: loop body
LE: loop exit
PB: predicated region body
PF: predicated region fallthrough
CT: control target
= control target key end

     0   :  { %s435_s2 = inlined_call_operand.vmem [shape: f32[8,512], index: 2, kind: input, shape index: {}]   ;;  %s436_s3 = inlined_call_operand.vmem [shape: f32[8,512], index: 3, kind: input, shape index: {}]   ;;  %s437_s0 = inlined_call_operand.vmem [shape: f32[8,512], index: 0, kind: input, shape index: {}]   ;;  %s438_s1 = inlined_call_operand.vmem [shape: f32[8,512], index: 1, kind: input, shape index: {}]   ;;  %s439_s4 = inlined_call_operand.vmem [shape: f32[8,128], index: 4, kind: output, shape index: {}]  }
   0x1   :  { %v164_v0 = vld [vmem:[%s436_s3] sm:$0xff]  ;;  %v165_v1 = vld [vmem:[%s436_s3 + $0x8] sm:$0xff]  ;;  %v166_v2 = vld [vmem:[%s436_s3 + $0x10] sm:$0xff] }
   0x2   :  { %v167_v3 = vld [vmem:[%s436_s3 + $0x18] sm:$0xff]  ;;  %v236_v4 = vld [vmem:[%s435_s2] sm:$0xff]  ;;  %v237_v5 = vld [vmem:[%s435_s2 + $0x8] sm:$0xff] }
   0x3   :  { %v238_v6 = vld [vmem:[%s435_s2 + $0x10] sm:$0xff]  ;;  %v239_v7 = vld [vmem:[%s435_s2 + $0x18] sm:$0xff]  ;;  %v240_v8 = vsub.f32 %v164_v0, %v236_v4  ;;  %v241_v9 = vsub.f32 %v165_v1, %v237_v5  ;;  %v174_v10 = vld [vmem:[%s437_s0] sm:$0xff] }
   0x4   :  { %v242_v11 = vsub.f32 %v166_v2, %v238_v6  ;;  %v243_v12 = vsub.f32 %v167_v3, %v239_v7  ;;  %v175_v13 = vld [vmem:[%s437_s0 + $0x8] sm:$0xff]  ;;  %v176_v14 = vld [vmem:[%s437_s0 + $0x10] sm:$0xff]  ;;  %v177_v15 = vld [vmem:[%s437_s0 + $0x18] sm:$0xff]  ;;  %v178_v16 = vsub.f32 %v164_v0, %v174_v10  ;;  %v311_v6 = vlaneseq }
   0x5   :  { %v244_v17 = vand.u32 2147483647, %v240_v8  ;;  %v245_v18 = vand.u32 2147483647, %v241_v9  ;;  %v179_v19 = vsub.f32 %v165_v1, %v175_v13  ;;  %v180_v20 = vsub.f32 %v166_v2, %v176_v14  ;;  %v206_v21 = vld [vmem:[%s438_s1] sm:$0xff]  ;;  %v207_v22 = vld [vmem:[%s438_s1 + $0x8] sm:$0xff] }
   0x6   :  { %v246_v23 = vand.u32 2147483647, %v242_v11  ;;  %v247_v24 = vand.u32 2147483647, %v243_v12  ;;  %v181_v25 = vsub.f32 %v167_v3, %v177_v15  ;;  %v182_v26 = vand.u32 2147483647, %v178_v16 }
   0x7   :  { %v299_v27 = vadd.f32 %v245_v18, %v244_v17  ;;  %v183_v28 = vand.u32 2147483647, %v179_v19  ;;  %v184_v29 = vand.u32 2147483647, %v180_v20  ;;  %v208_v30 = vld [vmem:[%s438_s1 + $0x10] sm:$0xff]  ;;  %v209_v31 = vld [vmem:[%s438_s1 + $0x18] sm:$0xff]  ;;  %v210_v32 = vsub.f32 %v164_v0, %v206_v21 }
   0x8   :  { %v211_v33 = vsub.f32 %v165_v1, %v207_v22  ;;  %v212_v34 = vsub.f32 %v166_v2, %v208_v30  ;;  %v213_v35 = vsub.f32 %v167_v3, %v209_v31  ;;  %v185_v37 = vand.u32 2147483647, %v181_v25 }
   0x9   :  { %v300_v36 = vadd.f32 %v299_v27, %v246_v23  ;;  %v267_v38 = vadd.f32 %v183_v28, %v182_v26  ;;  %v214_v39 = vand.u32 2147483647, %v210_v32  ;;  %v312_v7 = vand.u32 127, %v311_v6 }
   0xa   :  { %v215_v40 = vand.u32 2147483647, %v211_v33  ;;  %v216_v41 = vand.u32 2147483647, %v212_v34  ;;  %v217_v44 = vand.u32 2147483647, %v213_v35 }
   0xb   :  { %v301_v42 = vadd.f32 %v300_v36, %v247_v24  ;;  %v268_v43 = vadd.f32 %v267_v38, %v184_v29  ;;  %vm313_vm0 = vcmp.eq.s32.totalorder %v312_v7, 0  ;;  %vm316_vm1 = vcmp.eq.s32.totalorder %v312_v7, 1 }
   0xc   :  { %v283_v45 = vadd.f32 %v215_v40, %v214_v39  ;;  %vm320_vm2 = vcmp.eq.s32.totalorder %v312_v7, 2 }
   0xd   :  { %302 = vadd.xlane.f32.xlu1 %v301_v42  ;;  %v269_v46 = vadd.f32 %v268_v43, %v185_v37 }
   0xe   :  { %v284_v47 = vadd.f32 %v283_v45, %v216_v41 }
   0xf   :  { %270 = vadd.xlane.f32.xlu0 %v269_v46 }
  0x10   :  { %v285_v48 = vadd.f32 %v284_v47, %v217_v44 }
  0x13   :  { %286 = vadd.xlane.f32.xlu0 %v285_v48 }
  0x96   :  { %v303_v49 = vpop.xlane.xlu1 %302 }
  0x97   :  { %v304_v50 = vrot.slane %v303_v49, 4 }
  0x98   :  { %v271_v51 = vpop.xlane.xlu0 %270 }
  0x99   :  { %v305_v52 = vadd.f32 %v304_v50, %v303_v49  ;;  %v272_v53 = vrot.slane %v271_v51, 4 }
  0x9b   :  { %v273_v54 = vadd.f32 %v272_v53, %v271_v51  ;;  %v306_v55 = vrot.slane %v305_v52, 2 }
  0x9c   :  { %v287_v56 = vpop.xlane.xlu0 %286 }
  0x9d   :  { %v274_v57 = vrot.slane %v273_v54, 2  ;;  %v288_v58 = vrot.slane %v287_v56, 4  ;;  %v307_v61 = vadd.f32 %v306_v55, %v305_v52 }
  0x9f   :  { %v289_v59 = vadd.f32 %v288_v58, %v287_v56  ;;  %v275_v60 = vadd.f32 %v274_v57, %v273_v54  ;;  %v308_v2 = vrot.slane %v307_v61, 1 }
  0xa1   :  { %v290_v62 = vrot.slane %v289_v59, 2  ;;  %v276_v63 = vrot.slane %v275_v60, 1  ;;  %v309_v5 = vadd.f32 %v308_v2, %v307_v61 }
  0xa3   :  { %v291_v0 = vadd.f32 %v290_v62, %v289_v59  ;;  %v277_v1 = vadd.f32 %v276_v63, %v275_v60 }
  0xa5   :  { %353 = vpush %v277_v1  ;;  %v292_v3 = vrot.slane %v291_v0, 1 }
  0xa7   :  { %v293_v4 = vadd.f32 %v292_v3, %v291_v0 }
  0xa9   :  { %355 = vpush %v293_v4 }
  0xaa   :  { %357 = vpush %v309_v5 }
  0xd6   :  { %s354_s1 = spop %353 }
  0xd7   :  { %v314_v8 = vstv %s354_s1 }
  0xd8   :  { %v315_v10 = vsel %vm313_vm0, %v314_v8, 0.0 }
  0xda   :  { %s356_s18 = spop %355 }
  0xdb   :  { %v317_v9 = vstv %s356_s18  ;;  %s358_s19 = spop %357 }
  0xdc   :  { %v318_v11 = vsel %vm316_vm1, %v317_v9, 0.0  ;;  %v321_v12 = vstv %s358_s19 }
  0xdd   :  { %v319_v13 = vadd.f32 %v318_v11, %v315_v10  ;;  %v322_v14 = vsel %vm320_vm2, %v321_v12, 0.0 }
  0xdf   :  { %v323_v15 = vadd.f32 %v322_v14, %v319_v13 }
  0xe1   :  { %324 = vst [vmem:[%s439_s4] sm:$0xff] %v323_v15 }

</bundles_post_ra>
